<compile_context>
chip_gen: v7x
topology: tpu7x:2x2x1
jax: 0.10.0
libtpu: 0.0.40
codegen_flags: <defaults>
</compile_context>

<pallas_src>
import jax
import jax.numpy as jnp
from jax.experimental import pallas as pl
from jax.experimental.pallas import tpu as pltpu

ALPHA = 3.0  # graph_constructor default alpha


# ------------------------------ tiny exact-f32 matmul ------------------------------ #

def _mm(a, b):
    """Exact-f32 `a @ b` for tiny operands, entirely on the VPU.

    Unrolled over the contraction dim as a sum of rank-1 outer products:
    (m, 1) column (lane-broadcast) x (1, n) row (sublane-broadcast).  A 5-wide
    contraction is pure fill/drain latency on the MXU, and the VPU path keeps full f32
    precision so the kernel matches a HIGHEST-precision reference.
    """
    k = a.shape[1]
    acc = a[:, 0:1] * b[0:1, :]
    for t in range(1, k):
        acc = acc + a[:, t:t + 1] * b[t:t + 1, :]
    return acc


# ------------------------------ init-side parameter packing ------------------------ #

def pack_params(params, idx):
    """One-time packing of every GlobalAttention2_ parameter (plus the embedding gather
    for the fixed node set `idx`) into a single lane-major f32 slab.

    This removes ~8 tiny per-call operand DMAs and all per-call satellite XLA ops
    (embedding gather, weight transposes) from the forward path (perf review items 1/2).
    """
    assert params["mlp_w"].shape[1] == 1 and params["w_sel"].shape[1] == 1, \
        "kernel assumes n_heads * d_sel == 1 (GlobalAttention2_ defaults)"
    nv1 = jnp.asarray(params["emb1"], jnp.float32)[idx]          # (N, dim)
    nv2 = jnp.asarray(params["emb2"], jnp.float32)[idx]
    w1 = jnp.asarray(params["lin1_w"], jnp.float32)              # (dim, dim), stored (in, out)
    w2 = jnp.asarray(params["lin2_w"], jnp.float32)
    b1 = jnp.asarray(params["lin1_b"], jnp.float32).reshape(1, -1)
    b2 = jnp.asarray(params["lin2_b"], jnp.float32).reshape(1, -1)
    mlp_w_row = jnp.asarray(params["mlp_w"], jnp.float32).reshape(1, -1)   # (1, L)
    mlp_b = jnp.asarray(params["mlp_b"], jnp.float32).reshape(1, 1)        # (1, 1)
    w_sel_row = jnp.asarray(params["w_sel"], jnp.float32).reshape(1, -1)   # (1, G)

    pieces = [
        ("nv1", nv1), ("nv2", nv2), ("nv1T", nv1.T), ("nv2T", nv2.T),
        ("w1", w1), ("w2", w2), ("w1T", w1.T), ("w2T", w2.T),
        ("b1_row", b1), ("b2_row", b2), ("b1_col", b1.T), ("b2_col", b2.T),
        ("mlp_w_row", mlp_w_row), ("mlp_b", mlp_b), ("w_sel_row", w_sel_row),
    ]
    width = max(int(p.shape[1]) for _, p in pieces)
    rows, layout, r = [], {}, 0
    for name, p in pieces:
        layout[name] = (r, (int(p.shape[0]), int(p.shape[1])))
        rows.append(jnp.pad(p, ((0, 0), (0, width - int(p.shape[1])))))
        r += int(p.shape[0])
    slab = jnp.concatenate(rows, axis=0)     # (55, 16) f32 at the default module sizes
    return slab, layout


# ---------------------------------- fused kernel ----------------------------------- #

def _make_kernel(layout, B, N, L, G, dim):
    def sl(ref, name):
        r, (h, w) = layout[name]
        return ref[r:r + h, 0:w]             # static VMEM slice

    def kernel(p_ref, x2d_ref, xt_ref, o_ref):
        # -------- graph_constructor.forward (batch-independent) --------
        nv1, nv2 = sl(p_ref, "nv1"), sl(p_ref, "nv2")
        nv1t, nv2t = sl(p_ref, "nv1T"), sl(p_ref, "nv2T")
        w1, w2 = sl(p_ref, "w1"), sl(p_ref, "w2")
        w1t, w2t = sl(p_ref, "w1T"), sl(p_ref, "w2T")
        b1r, b2r = sl(p_ref, "b1_row"), sl(p_ref, "b2_row")
        b1c, b2c = sl(p_ref, "b1_col"), sl(p_ref, "b2_col")

        n1 = jnp.tanh(ALPHA * (_mm(nv1, w1) + b1r))        # (N, dim)
        n2 = jnp.tanh(ALPHA * (_mm(nv2, w2) + b2r))        # (N, dim)
        n1t = jnp.tanh(ALPHA * (_mm(w1t, nv1t) + b1c))     # (dim, N) == n1.T exactly
        n2t = jnp.tanh(ALPHA * (_mm(w2t, nv2t) + b2c))     # (dim, N) == n2.T exactly
        m12 = _mm(n1, n2t)                                 # n1 @ n2.T
        m21 = _mm(n2, n1t)                                 # n2 @ n1.T  (== m12.T exactly)
        # adj = tanh(alpha*(m12 - m21)); downstream only adj.T is needed and
        # adj.T == tanh(alpha*(m21 - m12)) elementwise-exactly.  k == nnodes makes the
        # topk/scatter mask all-ones (adj unmasked); forward() applies no relu to adj.
        adj_t = jnp.tanh(ALPHA * (m21 - m12))              # (N, N)

        # -------- SelectAttention, stacked over the whole batch --------
        mlp_w_row = sl(p_ref, "mlp_w_row")                 # (1, L)
        mlp_b = sl(p_ref, "mlp_b")                         # (1, 1)
        w_sel_row = sl(p_ref, "w_sel_row")                 # (1, G)
        x2d = x2d_ref[...]                                 # (B*N, L)
        newx = jnp.tanh(jnp.sum(x2d * mlp_w_row, axis=-1, keepdims=True) + mlp_b)  # (B*N, 1)
        sel = jnp.maximum(newx * w_sel_row, 0.0)           # (B*N, G)

        # -------- per-batch scores / softmax / value mix (B is tiny -> static unroll) --
        for b in range(B):
            sel_b = sel[b * N:(b + 1) * N, :]              # (N, G)
            scores = _mm(adj_t, sel_b)                     # (N, G) = einsum('ls,lg->sg', adj, sel)
            m = jnp.max(scores, axis=-1, keepdims=True)
            e = jnp.exp(scores - m)
            series = e / jnp.sum(e, axis=-1, keepdims=True)   # exact divide (review feedback)
            # einsum('bls,blg->bsg') per batch = x_b.T @ series, emitted directly as (L, G).
            o_ref[b] = _mm(xt_ref[b], series)

    return kernel


# ------------------------------------ wrapper --------------------------------------- #

def make_forward(layout, B, N, L, G, dim):
    kernel = _make_kernel(layout, B, N, L, G, dim)
    n_rows = max(r + h for r, (h, _) in layout.values())
    width = max(w for _, (_, w) in layout.values())

    flops = int(4 * 2 * N * dim * dim            # n1, n2, n1.T, n2.T
                + 2 * 2 * N * N * dim            # m12, m21
                + B * (2 * N * L                 # MLP lane-reduce
                       + N * G                   # select outer product
                       + 2 * N * N * G           # adj.T @ sel
                       + 2 * L * N * G))         # x.T @ series
    transcendentals = int(4 * N * dim + N * N + B * (N + N * G))
    bytes_accessed = int(4 * (n_rows * width + 2 * B * N * L + B * L * G))

    vmem_spec = pl.BlockSpec(memory_space=pltpu.MemorySpace.VMEM)

    @jax.jit
    def forward(slab, x):
        """x: (B, N, L), exactly the PyTorch module's `x`.  Returns (V, None) with
        V of shape (B, L, G) == torch.einsum('bls,blg->bsg', x, series)."""
        x2d = x.reshape(B * N, L)                # row-stacked view for the MLP / select
        xt = jnp.swapaxes(x, 1, 2)               # (B, L, N) orientation for the value mix
        v = pl.pallas_call(
            kernel,
            out_shape=jax.ShapeDtypeStruct((B, L, G), jnp.float32),
            in_specs=[vmem_spec, vmem_spec, vmem_spec],
            out_specs=vmem_spec,
            cost_estimate=pl.CostEstimate(flops=flops,
                                          transcendentals=transcendentals,
                                          bytes_accessed=bytes_accessed),
        )(slab, x2d, xt)
        return v, None                           # output_attention=False -> (V, None)

    return forward


# ------------------------------ pure-JAX reference ---------------------------------- #

def reference_forward(idx, x, p):
    """HIGHEST-precision pure-JAX transcription of GlobalAttention2_.forward."""
    hp = jax.lax.Precision.HIGHEST
    nv1 = p["emb1"][idx]
    nv2 = p["emb2"][idx]
    n1 = jnp.tanh(ALPHA * (jnp.dot(nv1, p["lin1_w"], precision=hp) + p["lin1_b"]))
    n2 = jnp.tanh(ALPHA * (jnp.dot(nv2, p["lin2_w"], precision=hp) + p["lin2_b"]))
    adj = jnp.tanh(ALPHA * (jnp.dot(n1, n2.T, precision=hp) - jnp.dot(n2, n1.T, precision=hp)))
    # k == nnodes => topk mask is all ones; the rand*0.01 noise only reorders a full top-k.
    B, N, L = x.shape
    newx = jnp.tanh(jnp.dot(x.reshape(B * N, L), p["mlp_w"], precision=hp) + p["mlp_b"])
    newx = newx.reshape(B, 1, N, -1)                                       # (B, H=1, N, d_sel)
    sel = jnp.maximum(jnp.einsum("bhnd,hgd->bhng", newx, p["w_sel"][None], precision=hp), 0.0)
    scores = jnp.einsum("ls,bhlg->bhsg", adj, sel, precision=hp)
    series = jax.nn.softmax(scores, axis=-1)
    return jnp.einsum("bls,blg->bsg", x, series[:, 0], precision=hp)


# -------------------------------------- main ----------------------------------------- #

if __name__ == "__main__":
    # Module defaults: embedding_dim=5, n_group=5, nsensor=5, n_heads=1, d_sel=1
    B, N, L = 2, 5, 16          # batch, nsensor, win_size
    dim, G = 5, 5
    hd = 1                      # n_heads * d_sel

    key = jax.random.PRNGKey(0)
    ks = jax.random.split(key, 10)
    params = {
        "emb1":   jax.random.normal(ks[0], (N, dim), jnp.float32),
        "emb2":   jax.random.normal(ks[1], (N, dim), jnp.float32),
        "lin1_w": jax.random.normal(ks[2], (dim, dim), jnp.float32) * 0.3,  # stored (in, out)
        "lin1_b": jax.random.normal(ks[3], (1, dim), jnp.float32) * 0.1,
        "lin2_w": jax.random.normal(ks[4], (dim, dim), jnp.float32) * 0.3,
        "lin2_b": jax.random.normal(ks[5], (1, dim), jnp.float32) * 0.1,
        "mlp_w":  jax.random.normal(ks[6], (L, hd), jnp.float32) * 0.2,     # stored (in, out)
        "mlp_b":  jax.random.normal(ks[7], (1, hd), jnp.float32) * 0.1,
        "w_sel":  jax.random.normal(ks[8], (G, hd), jnp.float32),           # W with h=1 squeezed
    }
    x = jax.random.normal(ks[9], (B, N, L), jnp.float32)
    idx = jnp.arange(N, dtype=jnp.int32)

    # One-time init: gather embeddings for the (fixed) node set and pack everything into
    # a single parameter slab (perf review: collapse operands, hoist gather/transposes).
    slab, layout = pack_params(params, idx)
    forward = make_forward(layout, B, N, L, G, dim)

    v, attn = forward(slab, x)
    v = jax.block_until_ready(v)

    v_ref = reference_forward(idx, x, params)
    assert v.shape == (B, L, G)
    assert attn is None
    assert jnp.allclose(v, v_ref, atol=2e-3, rtol=2e-3), "mismatch vs pure-JAX reference"

    print("KERNEL_OK")
</pallas_src>

<mosaic_0001>
module attributes {stable_mosaic.version = 11 : i64} {
  func.func @kernel(%arg0: memref<55x16xf32, #tpu.memory_space<vmem>>, %arg1: memref<10x16xf32, #tpu.memory_space<vmem>>, %arg2: memref<2x16x5xf32, #tpu.memory_space<vmem>>, %arg3: memref<2x16x5xf32, #tpu.memory_space<vmem>>) attributes {dimension_semantics = [], scalar_prefetch = 0 : i64, scratch_operands = 0 : i64, tpu.core_type = #tpu.core_type<tc>} {
    %c0 = arith.constant 0 : index
    %c0_0 = arith.constant 0 : index
    %0 = vector.load %arg0[%c0, %c0_0] : memref<55x16xf32, #tpu.memory_space<vmem>>, vector<5x5xf32>
    %c5 = arith.constant 5 : index
    %c0_1 = arith.constant 0 : index
    %1 = vector.load %arg0[%c5, %c0_1] : memref<55x16xf32, #tpu.memory_space<vmem>>, vector<5x5xf32>
    %c10 = arith.constant 10 : index
    %c0_2 = arith.constant 0 : index
    %2 = vector.load %arg0[%c10, %c0_2] : memref<55x16xf32, #tpu.memory_space<vmem>>, vector<5x5xf32>
    %c15 = arith.constant 15 : index
    %c0_3 = arith.constant 0 : index
    %3 = vector.load %arg0[%c15, %c0_3] : memref<55x16xf32, #tpu.memory_space<vmem>>, vector<5x5xf32>
    %c20 = arith.constant 20 : index
    %c0_4 = arith.constant 0 : index
    %4 = vector.load %arg0[%c20, %c0_4] : memref<55x16xf32, #tpu.memory_space<vmem>>, vector<5x5xf32>
    %c25 = arith.constant 25 : index
    %c0_5 = arith.constant 0 : index
    %5 = vector.load %arg0[%c25, %c0_5] : memref<55x16xf32, #tpu.memory_space<vmem>>, vector<5x5xf32>
    %c30 = arith.constant 30 : index
    %c0_6 = arith.constant 0 : index
    %6 = vector.load %arg0[%c30, %c0_6] : memref<55x16xf32, #tpu.memory_space<vmem>>, vector<5x5xf32>
    %c35 = arith.constant 35 : index
    %c0_7 = arith.constant 0 : index
    %7 = vector.load %arg0[%c35, %c0_7] : memref<55x16xf32, #tpu.memory_space<vmem>>, vector<5x5xf32>
    %c40 = arith.constant 40 : index
    %c0_8 = arith.constant 0 : index
    %8 = vector.load %arg0[%c40, %c0_8] : memref<55x16xf32, #tpu.memory_space<vmem>>, vector<1x5xf32>
    %c41 = arith.constant 41 : index
    %c0_9 = arith.constant 0 : index
    %9 = vector.load %arg0[%c41, %c0_9] : memref<55x16xf32, #tpu.memory_space<vmem>>, vector<1x5xf32>
    %c42 = arith.constant 42 : index
    %c0_10 = arith.constant 0 : index
    %10 = vector.load %arg0[%c42, %c0_10] : memref<55x16xf32, #tpu.memory_space<vmem>>, vector<5x1xf32>
    %c47 = arith.constant 47 : index
    %c0_11 = arith.constant 0 : index
    %11 = vector.load %arg0[%c47, %c0_11] : memref<55x16xf32, #tpu.memory_space<vmem>>, vector<5x1xf32>
    %12 = vector.extract_strided_slice %0 {offsets = [0, 0], sizes = [5, 1], strides = [1, 1]} : vector<5x5xf32> to vector<5x1xf32>
    %13 = vector.extract_strided_slice %4 {offsets = [0, 0], sizes = [1, 5], strides = [1, 1]} : vector<5x5xf32> to vector<1x5xf32>
    %14 = vector.broadcast %12 : vector<5x1xf32> to vector<5x5xf32>
    %15 = vector.broadcast %13 : vector<1x5xf32> to vector<5x5xf32>
    %16 = arith.mulf %14, %15 : vector<5x5xf32>
    %17 = vector.extract_strided_slice %0 {offsets = [0, 1], sizes = [5, 1], strides = [1, 1]} : vector<5x5xf32> to vector<5x1xf32>
    %18 = vector.extract_strided_slice %4 {offsets = [1, 0], sizes = [1, 5], strides = [1, 1]} : vector<5x5xf32> to vector<1x5xf32>
    %19 = vector.broadcast %17 : vector<5x1xf32> to vector<5x5xf32>
    %20 = vector.broadcast %18 : vector<1x5xf32> to vector<5x5xf32>
    %21 = arith.mulf %19, %20 : vector<5x5xf32>
    %22 = arith.addf %16, %21 : vector<5x5xf32>
    %23 = vector.extract_strided_slice %0 {offsets = [0, 2], sizes = [5, 1], strides = [1, 1]} : vector<5x5xf32> to vector<5x1xf32>
    %24 = vector.extract_strided_slice %4 {offsets = [2, 0], sizes = [1, 5], strides = [1, 1]} : vector<5x5xf32> to vector<1x5xf32>
    %25 = vector.broadcast %23 : vector<5x1xf32> to vector<5x5xf32>
    %26 = vector.broadcast %24 : vector<1x5xf32> to vector<5x5xf32>
    %27 = arith.mulf %25, %26 : vector<5x5xf32>
    %28 = arith.addf %22, %27 : vector<5x5xf32>
    %29 = vector.extract_strided_slice %0 {offsets = [0, 3], sizes = [5, 1], strides = [1, 1]} : vector<5x5xf32> to vector<5x1xf32>
    %30 = vector.extract_strided_slice %4 {offsets = [3, 0], sizes = [1, 5], strides = [1, 1]} : vector<5x5xf32> to vector<1x5xf32>
    %31 = vector.broadcast %29 : vector<5x1xf32> to vector<5x5xf32>
    %32 = vector.broadcast %30 : vector<1x5xf32> to vector<5x5xf32>
    %33 = arith.mulf %31, %32 : vector<5x5xf32>
    %34 = arith.addf %28, %33 : vector<5x5xf32>
    %35 = vector.extract_strided_slice %0 {offsets = [0, 4], sizes = [5, 1], strides = [1, 1]} : vector<5x5xf32> to vector<5x1xf32>
    %36 = vector.extract_strided_slice %4 {offsets = [4, 0], sizes = [1, 5], strides = [1, 1]} : vector<5x5xf32> to vector<1x5xf32>
    %37 = vector.broadcast %35 : vector<5x1xf32> to vector<5x5xf32>
    %38 = vector.broadcast %36 : vector<1x5xf32> to vector<5x5xf32>
    %39 = arith.mulf %37, %38 : vector<5x5xf32>
    %40 = arith.addf %34, %39 : vector<5x5xf32>
    %41 = vector.broadcast %8 : vector<1x5xf32> to vector<5x5xf32>
    %42 = arith.addf %40, %41 : vector<5x5xf32>
    %cst = arith.constant 3.000000e+00 : f32
    %43 = vector.broadcast %cst : f32 to vector<5x5xf32>
    %44 = arith.mulf %43, %42 : vector<5x5xf32>
    %45 = math.tanh %44 : vector<5x5xf32>
    %46 = vector.extract_strided_slice %1 {offsets = [0, 0], sizes = [5, 1], strides = [1, 1]} : vector<5x5xf32> to vector<5x1xf32>
    %47 = vector.extract_strided_slice %5 {offsets = [0, 0], sizes = [1, 5], strides = [1, 1]} : vector<5x5xf32> to vector<1x5xf32>
    %48 = vector.broadcast %46 : vector<5x1xf32> to vector<5x5xf32>
    %49 = vector.broadcast %47 : vector<1x5xf32> to vector<5x5xf32>
    %50 = arith.mulf %48, %49 : vector<5x5xf32>
    %51 = vector.extract_strided_slice %1 {offsets = [0, 1], sizes = [5, 1], strides = [1, 1]} : vector<5x5xf32> to vector<5x1xf32>
    %52 = vector.extract_strided_slice %5 {offsets = [1, 0], sizes = [1, 5], strides = [1, 1]} : vector<5x5xf32> to vector<1x5xf32>
    %53 = vector.broadcast %51 : vector<5x1xf32> to vector<5x5xf32>
    %54 = vector.broadcast %52 : vector<1x5xf32> to vector<5x5xf32>
    %55 = arith.mulf %53, %54 : vector<5x5xf32>
    %56 = arith.addf %50, %55 : vector<5x5xf32>
    %57 = vector.extract_strided_slice %1 {offsets = [0, 2], sizes = [5, 1], strides = [1, 1]} : vector<5x5xf32> to vector<5x1xf32>
    %58 = vector.extract_strided_slice %5 {offsets = [2, 0], sizes = [1, 5], strides = [1, 1]} : vector<5x5xf32> to vector<1x5xf32>
    %59 = vector.broadcast %57 : vector<5x1xf32> to vector<5x5xf32>
    %60 = vector.broadcast %58 : vector<1x5xf32> to vector<5x5xf32>
    %61 = arith.mulf %59, %60 : vector<5x5xf32>
    %62 = arith.addf %56, %61 : vector<5x5xf32>
    %63 = vector.extract_strided_slice %1 {offsets = [0, 3], sizes = [5, 1], strides = [1, 1]} : vector<5x5xf32> to vector<5x1xf32>
    %64 = vector.extract_strided_slice %5 {offsets = [3, 0], sizes = [1, 5], strides = [1, 1]} : vector<5x5xf32> to vector<1x5xf32>
    %65 = vector.broadcast %63 : vector<5x1xf32> to vector<5x5xf32>
    %66 = vector.broadcast %64 : vector<1x5xf32> to vector<5x5xf32>
    %67 = arith.mulf %65, %66 : vector<5x5xf32>
    %68 = arith.addf %62, %67 : vector<5x5xf32>
    %69 = vector.extract_strided_slice %1 {offsets = [0, 4], sizes = [5, 1], strides = [1, 1]} : vector<5x5xf32> to vector<5x1xf32>
    %70 = vector.extract_strided_slice %5 {offsets = [4, 0], sizes = [1, 5], strides = [1, 1]} : vector<5x5xf32> to vector<1x5xf32>
    %71 = vector.broadcast %69 : vector<5x1xf32> to vector<5x5xf32>
    %72 = vector.broadcast %70 : vector<1x5xf32> to vector<5x5xf32>
    %73 = arith.mulf %71, %72 : vector<5x5xf32>
    %74 = arith.addf %68, %73 : vector<5x5xf32>
    %75 = vector.broadcast %9 : vector<1x5xf32> to vector<5x5xf32>
    %76 = arith.addf %74, %75 : vector<5x5xf32>
    %cst_12 = arith.constant 3.000000e+00 : f32
    %77 = vector.broadcast %cst_12 : f32 to vector<5x5xf32>
    %78 = arith.mulf %77, %76 : vector<5x5xf32>
    %79 = math.tanh %78 : vector<5x5xf32>
    %80 = vector.extract_strided_slice %6 {offsets = [0, 0], sizes = [5, 1], strides = [1, 1]} : vector<5x5xf32> to vector<5x1xf32>
    %81 = vector.extract_strided_slice %2 {offsets = [0, 0], sizes = [1, 5], strides = [1, 1]} : vector<5x5xf32> to vector<1x5xf32>
    %82 = vector.broadcast %80 : vector<5x1xf32> to vector<5x5xf32>
    %83 = vector.broadcast %81 : vector<1x5xf32> to vector<5x5xf32>
    %84 = arith.mulf %82, %83 : vector<5x5xf32>
    %85 = vector.extract_strided_slice %6 {offsets = [0, 1], sizes = [5, 1], strides = [1, 1]} : vector<5x5xf32> to vector<5x1xf32>
    %86 = vector.extract_strided_slice %2 {offsets = [1, 0], sizes = [1, 5], strides = [1, 1]} : vector<5x5xf32> to vector<1x5xf32>
    %87 = vector.broadcast %85 : vector<5x1xf32> to vector<5x5xf32>
    %88 = vector.broadcast %86 : vector<1x5xf32> to vector<5x5xf32>
    %89 = arith.mulf %87, %88 : vector<5x5xf32>
    %90 = arith.addf %84, %89 : vector<5x5xf32>
    %91 = vector.extract_strided_slice %6 {offsets = [0, 2], sizes = [5, 1], strides = [1, 1]} : vector<5x5xf32> to vector<5x1xf32>
    %92 = vector.extract_strided_slice %2 {offsets = [2, 0], sizes = [1, 5], strides = [1, 1]} : vector<5x5xf32> to vector<1x5xf32>
    %93 = vector.broadcast %91 : vector<5x1xf32> to vector<5x5xf32>
    %94 = vector.broadcast %92 : vector<1x5xf32> to vector<5x5xf32>
    %95 = arith.mulf %93, %94 : vector<5x5xf32>
    %96 = arith.addf %90, %95 : vector<5x5xf32>
    %97 = vector.extract_strided_slice %6 {offsets = [0, 3], sizes = [5, 1], strides = [1, 1]} : vector<5x5xf32> to vector<5x1xf32>
    %98 = vector.extract_strided_slice %2 {offsets = [3, 0], sizes = [1, 5], strides = [1, 1]} : vector<5x5xf32> to vector<1x5xf32>
    %99 = vector.broadcast %97 : vector<5x1xf32> to vector<5x5xf32>
    %100 = vector.broadcast %98 : vector<1x5xf32> to vector<5x5xf32>
    %101 = arith.mulf %99, %100 : vector<5x5xf32>
    %102 = arith.addf %96, %101 : vector<5x5xf32>
    %103 = vector.extract_strided_slice %6 {offsets = [0, 4], sizes = [5, 1], strides = [1, 1]} : vector<5x5xf32> to vector<5x1xf32>
    %104 = vector.extract_strided_slice %2 {offsets = [4, 0], sizes = [1, 5], strides = [1, 1]} : vector<5x5xf32> to vector<1x5xf32>
    %105 = vector.broadcast %103 : vector<5x1xf32> to vector<5x5xf32>
    %106 = vector.broadcast %104 : vector<1x5xf32> to vector<5x5xf32>
    %107 = arith.mulf %105, %106 : vector<5x5xf32>
    %108 = arith.addf %102, %107 : vector<5x5xf32>
    %109 = vector.broadcast %10 : vector<5x1xf32> to vector<5x5xf32>
    %110 = arith.addf %108, %109 : vector<5x5xf32>
    %cst_13 = arith.constant 3.000000e+00 : f32
    %111 = vector.broadcast %cst_13 : f32 to vector<5x5xf32>
    %112 = arith.mulf %111, %110 : vector<5x5xf32>
    %113 = math.tanh %112 : vector<5x5xf32>
    %114 = vector.extract_strided_slice %7 {offsets = [0, 0], sizes = [5, 1], strides = [1, 1]} : vector<5x5xf32> to vector<5x1xf32>
    %115 = vector.extract_strided_slice %3 {offsets = [0, 0], sizes = [1, 5], strides = [1, 1]} : vector<5x5xf32> to vector<1x5xf32>
    %116 = vector.broadcast %114 : vector<5x1xf32> to vector<5x5xf32>
    %117 = vector.broadcast %115 : vector<1x5xf32> to vector<5x5xf32>
    %118 = arith.mulf %116, %117 : vector<5x5xf32>
    %119 = vector.extract_strided_slice %7 {offsets = [0, 1], sizes = [5, 1], strides = [1, 1]} : vector<5x5xf32> to vector<5x1xf32>
    %120 = vector.extract_strided_slice %3 {offsets = [1, 0], sizes = [1, 5], strides = [1, 1]} : vector<5x5xf32> to vector<1x5xf32>
    %121 = vector.broadcast %119 : vector<5x1xf32> to vector<5x5xf32>
    %122 = vector.broadcast %120 : vector<1x5xf32> to vector<5x5xf32>
    %123 = arith.mulf %121, %122 : vector<5x5xf32>
    %124 = arith.addf %118, %123 : vector<5x5xf32>
    %125 = vector.extract_strided_slice %7 {offsets = [0, 2], sizes = [5, 1], strides = [1, 1]} : vector<5x5xf32> to vector<5x1xf32>
    %126 = vector.extract_strided_slice %3 {offsets = [2, 0], sizes = [1, 5], strides = [1, 1]} : vector<5x5xf32> to vector<1x5xf32>
    %127 = vector.broadcast %125 : vector<5x1xf32> to vector<5x5xf32>
    %128 = vector.broadcast %126 : vector<1x5xf32> to vector<5x5xf32>
    %129 = arith.mulf %127, %128 : vector<5x5xf32>
    %130 = arith.addf %124, %129 : vector<5x5xf32>
    %131 = vector.extract_strided_slice %7 {offsets = [0, 3], sizes = [5, 1], strides = [1, 1]} : vector<5x5xf32> to vector<5x1xf32>
    %132 = vector.extract_strided_slice %3 {offsets = [3, 0], sizes = [1, 5], strides = [1, 1]} : vector<5x5xf32> to vector<1x5xf32>
    %133 = vector.broadcast %131 : vector<5x1xf32> to vector<5x5xf32>
    %134 = vector.broadcast %132 : vector<1x5xf32> to vector<5x5xf32>
    %135 = arith.mulf %133, %134 : vector<5x5xf32>
    %136 = arith.addf %130, %135 : vector<5x5xf32>
    %137 = vector.extract_strided_slice %7 {offsets = [0, 4], sizes = [5, 1], strides = [1, 1]} : vector<5x5xf32> to vector<5x1xf32>
    %138 = vector.extract_strided_slice %3 {offsets = [4, 0], sizes = [1, 5], strides = [1, 1]} : vector<5x5xf32> to vector<1x5xf32>
    %139 = vector.broadcast %137 : vector<5x1xf32> to vector<5x5xf32>
    %140 = vector.broadcast %138 : vector<1x5xf32> to vector<5x5xf32>
    %141 = arith.mulf %139, %140 : vector<5x5xf32>
    %142 = arith.addf %136, %141 : vector<5x5xf32>
    %143 = vector.broadcast %11 : vector<5x1xf32> to vector<5x5xf32>
    %144 = arith.addf %142, %143 : vector<5x5xf32>
    %cst_14 = arith.constant 3.000000e+00 : f32
    %145 = vector.broadcast %cst_14 : f32 to vector<5x5xf32>
    %146 = arith.mulf %145, %144 : vector<5x5xf32>
    %147 = math.tanh %146 : vector<5x5xf32>
    %148 = vector.extract_strided_slice %45 {offsets = [0, 0], sizes = [5, 1], strides = [1, 1]} : vector<5x5xf32> to vector<5x1xf32>
    %149 = vector.extract_strided_slice %147 {offsets = [0, 0], sizes = [1, 5], strides = [1, 1]} : vector<5x5xf32> to vector<1x5xf32>
    %150 = vector.broadcast %148 : vector<5x1xf32> to vector<5x5xf32>
    %151 = vector.broadcast %149 : vector<1x5xf32> to vector<5x5xf32>
    %152 = arith.mulf %150, %151 : vector<5x5xf32>
    %153 = vector.extract_strided_slice %45 {offsets = [0, 1], sizes = [5, 1], strides = [1, 1]} : vector<5x5xf32> to vector<5x1xf32>
    %154 = vector.extract_strided_slice %147 {offsets = [1, 0], sizes = [1, 5], strides = [1, 1]} : vector<5x5xf32> to vector<1x5xf32>
    %155 = vector.broadcast %153 : vector<5x1xf32> to vector<5x5xf32>
    %156 = vector.broadcast %154 : vector<1x5xf32> to vector<5x5xf32>
    %157 = arith.mulf %155, %156 : vector<5x5xf32>
    %158 = arith.addf %152, %157 : vector<5x5xf32>
    %159 = vector.extract_strided_slice %45 {offsets = [0, 2], sizes = [5, 1], strides = [1, 1]} : vector<5x5xf32> to vector<5x1xf32>
    %160 = vector.extract_strided_slice %147 {offsets = [2, 0], sizes = [1, 5], strides = [1, 1]} : vector<5x5xf32> to vector<1x5xf32>
    %161 = vector.broadcast %159 : vector<5x1xf32> to vector<5x5xf32>
    %162 = vector.broadcast %160 : vector<1x5xf32> to vector<5x5xf32>
    %163 = arith.mulf %161, %162 : vector<5x5xf32>
    %164 = arith.addf %158, %163 : vector<5x5xf32>
    %165 = vector.extract_strided_slice %45 {offsets = [0, 3], sizes = [5, 1], strides = [1, 1]} : vector<5x5xf32> to vector<5x1xf32>
    %166 = vector.extract_strided_slice %147 {offsets = [3, 0], sizes = [1, 5], strides = [1, 1]} : vector<5x5xf32> to vector<1x5xf32>
    %167 = vector.broadcast %165 : vector<5x1xf32> to vector<5x5xf32>
    %168 = vector.broadcast %166 : vector<1x5xf32> to vector<5x5xf32>
    %169 = arith.mulf %167, %168 : vector<5x5xf32>
    %170 = arith.addf %164, %169 : vector<5x5xf32>
    %171 = vector.extract_strided_slice %45 {offsets = [0, 4], sizes = [5, 1], strides = [1, 1]} : vector<5x5xf32> to vector<5x1xf32>
    %172 = vector.extract_strided_slice %147 {offsets = [4, 0], sizes = [1, 5], strides = [1, 1]} : vector<5x5xf32> to vector<1x5xf32>
    %173 = vector.broadcast %171 : vector<5x1xf32> to vector<5x5xf32>
    %174 = vector.broadcast %172 : vector<1x5xf32> to vector<5x5xf32>
    %175 = arith.mulf %173, %174 : vector<5x5xf32>
    %176 = arith.addf %170, %175 : vector<5x5xf32>
    %177 = vector.extract_strided_slice %79 {offsets = [0, 0], sizes = [5, 1], strides = [1, 1]} : vector<5x5xf32> to vector<5x1xf32>
    %178 = vector.extract_strided_slice %113 {offsets = [0, 0], sizes = [1, 5], strides = [1, 1]} : vector<5x5xf32> to vector<1x5xf32>
    %179 = vector.broadcast %177 : vector<5x1xf32> to vector<5x5xf32>
    %180 = vector.broadcast %178 : vector<1x5xf32> to vector<5x5xf32>
    %181 = arith.mulf %179, %180 : vector<5x5xf32>
    %182 = vector.extract_strided_slice %79 {offsets = [0, 1], sizes = [5, 1], strides = [1, 1]} : vector<5x5xf32> to vector<5x1xf32>
    %183 = vector.extract_strided_slice %113 {offsets = [1, 0], sizes = [1, 5], strides = [1, 1]} : vector<5x5xf32> to vector<1x5xf32>
    %184 = vector.broadcast %182 : vector<5x1xf32> to vector<5x5xf32>
    %185 = vector.broadcast %183 : vector<1x5xf32> to vector<5x5xf32>
    %186 = arith.mulf %184, %185 : vector<5x5xf32>
    %187 = arith.addf %181, %186 : vector<5x5xf32>
    %188 = vector.extract_strided_slice %79 {offsets = [0, 2], sizes = [5, 1], strides = [1, 1]} : vector<5x5xf32> to vector<5x1xf32>
    %189 = vector.extract_strided_slice %113 {offsets = [2, 0], sizes = [1, 5], strides = [1, 1]} : vector<5x5xf32> to vector<1x5xf32>
    %190 = vector.broadcast %188 : vector<5x1xf32> to vector<5x5xf32>
    %191 = vector.broadcast %189 : vector<1x5xf32> to vector<5x5xf32>
    %192 = arith.mulf %190, %191 : vector<5x5xf32>
    %193 = arith.addf %187, %192 : vector<5x5xf32>
    %194 = vector.extract_strided_slice %79 {offsets = [0, 3], sizes = [5, 1], strides = [1, 1]} : vector<5x5xf32> to vector<5x1xf32>
    %195 = vector.extract_strided_slice %113 {offsets = [3, 0], sizes = [1, 5], strides = [1, 1]} : vector<5x5xf32> to vector<1x5xf32>
    %196 = vector.broadcast %194 : vector<5x1xf32> to vector<5x5xf32>
    %197 = vector.broadcast %195 : vector<1x5xf32> to vector<5x5xf32>
    %198 = arith.mulf %196, %197 : vector<5x5xf32>
    %199 = arith.addf %193, %198 : vector<5x5xf32>
    %200 = vector.extract_strided_slice %79 {offsets = [0, 4], sizes = [5, 1], strides = [1, 1]} : vector<5x5xf32> to vector<5x1xf32>
    %201 = vector.extract_strided_slice %113 {offsets = [4, 0], sizes = [1, 5], strides = [1, 1]} : vector<5x5xf32> to vector<1x5xf32>
    %202 = vector.broadcast %200 : vector<5x1xf32> to vector<5x5xf32>
    %203 = vector.broadcast %201 : vector<1x5xf32> to vector<5x5xf32>
    %204 = arith.mulf %202, %203 : vector<5x5xf32>
    %205 = arith.addf %199, %204 : vector<5x5xf32>
    %206 = arith.subf %205, %176 : vector<5x5xf32>
    %cst_15 = arith.constant 3.000000e+00 : f32
    %207 = vector.broadcast %cst_15 : f32 to vector<5x5xf32>
    %208 = arith.mulf %207, %206 : vector<5x5xf32>
    %209 = math.tanh %208 : vector<5x5xf32>
    %c52 = arith.constant 52 : index
    %c0_16 = arith.constant 0 : index
    %210 = vector.load %arg0[%c52, %c0_16] : memref<55x16xf32, #tpu.memory_space<vmem>>, vector<1x16xf32>
    %c53 = arith.constant 53 : index
    %c0_17 = arith.constant 0 : index
    %211 = vector.load %arg0[%c53, %c0_17] : memref<55x16xf32, #tpu.memory_space<vmem>>, vector<1x1xf32>
    %c54 = arith.constant 54 : index
    %c0_18 = arith.constant 0 : index
    %212 = vector.load %arg0[%c54, %c0_18] : memref<55x16xf32, #tpu.memory_space<vmem>>, vector<1x5xf32>
    %c0_19 = arith.constant 0 : index
    %c0_20 = arith.constant 0 : index
    %213 = vector.load %arg1[%c0_19, %c0_20] : memref<10x16xf32, #tpu.memory_space<vmem>>, vector<10x16xf32>
    %214 = vector.broadcast %210 : vector<1x16xf32> to vector<10x16xf32>
    %215 = arith.mulf %213, %214 : vector<10x16xf32>
    %cst_21 = arith.constant dense<0.000000e+00> : vector<10xf32>
    %216 = vector.multi_reduction <add>, %215, %cst_21 [1] : vector<10x16xf32> to vector<10xf32>
    %217 = vector.shape_cast %216 : vector<10xf32> to vector<10x1xf32>
    %218 = vector.broadcast %211 : vector<1x1xf32> to vector<10x1xf32>
    %219 = arith.addf %217, %218 : vector<10x1xf32>
    %220 = math.tanh %219 : vector<10x1xf32>
    %221 = vector.broadcast %220 : vector<10x1xf32> to vector<10x5xf32>
    %222 = vector.broadcast %212 : vector<1x5xf32> to vector<10x5xf32>
    %223 = arith.mulf %221, %222 : vector<10x5xf32>
    %cst_22 = arith.constant 0.000000e+00 : f32
    %224 = vector.broadcast %cst_22 : f32 to vector<10x5xf32>
    %225 = arith.maximumf %223, %224 : vector<10x5xf32>
    %226 = vector.extract_strided_slice %225 {offsets = [0, 0], sizes = [5, 5], strides = [1, 1]} : vector<10x5xf32> to vector<5x5xf32>
    %227 = vector.extract_strided_slice %209 {offsets = [0, 0], sizes = [5, 1], strides = [1, 1]} : vector<5x5xf32> to vector<5x1xf32>
    %228 = vector.extract_strided_slice %226 {offsets = [0, 0], sizes = [1, 5], strides = [1, 1]} : vector<5x5xf32> to vector<1x5xf32>
    %229 = vector.broadcast %227 : vector<5x1xf32> to vector<5x5xf32>
    %230 = vector.broadcast %228 : vector<1x5xf32> to vector<5x5xf32>
    %231 = arith.mulf %229, %230 : vector<5x5xf32>
    %232 = vector.extract_strided_slice %209 {offsets = [0, 1], sizes = [5, 1], strides = [1, 1]} : vector<5x5xf32> to vector<5x1xf32>
    %233 = vector.extract_strided_slice %226 {offsets = [1, 0], sizes = [1, 5], strides = [1, 1]} : vector<5x5xf32> to vector<1x5xf32>
    %234 = vector.broadcast %232 : vector<5x1xf32> to vector<5x5xf32>
    %235 = vector.broadcast %233 : vector<1x5xf32> to vector<5x5xf32>
    %236 = arith.mulf %234, %235 : vector<5x5xf32>
    %237 = arith.addf %231, %236 : vector<5x5xf32>
    %238 = vector.extract_strided_slice %209 {offsets = [0, 2], sizes = [5, 1], strides = [1, 1]} : vector<5x5xf32> to vector<5x1xf32>
    %239 = vector.extract_strided_slice %226 {offsets = [2, 0], sizes = [1, 5], strides = [1, 1]} : vector<5x5xf32> to vector<1x5xf32>
    %240 = vector.broadcast %238 : vector<5x1xf32> to vector<5x5xf32>
    %241 = vector.broadcast %239 : vector<1x5xf32> to vector<5x5xf32>
    %242 = arith.mulf %240, %241 : vector<5x5xf32>
    %243 = arith.addf %237, %242 : vector<5x5xf32>
    %244 = vector.extract_strided_slice %209 {offsets = [0, 3], sizes = [5, 1], strides = [1, 1]} : vector<5x5xf32> to vector<5x1xf32>
    %245 = vector.extract_strided_slice %226 {offsets = [3, 0], sizes = [1, 5], strides = [1, 1]} : vector<5x5xf32> to vector<1x5xf32>
    %246 = vector.broadcast %244 : vector<5x1xf32> to vector<5x5xf32>
    %247 = vector.broadcast %245 : vector<1x5xf32> to vector<5x5xf32>
    %248 = arith.mulf %246, %247 : vector<5x5xf32>
    %249 = arith.addf %243, %248 : vector<5x5xf32>
    %250 = vector.extract_strided_slice %209 {offsets = [0, 4], sizes = [5, 1], strides = [1, 1]} : vector<5x5xf32> to vector<5x1xf32>
    %251 = vector.extract_strided_slice %226 {offsets = [4, 0], sizes = [1, 5], strides = [1, 1]} : vector<5x5xf32> to vector<1x5xf32>
    %252 = vector.broadcast %250 : vector<5x1xf32> to vector<5x5xf32>
    %253 = vector.broadcast %251 : vector<1x5xf32> to vector<5x5xf32>
    %254 = arith.mulf %252, %253 : vector<5x5xf32>
    %255 = arith.addf %249, %254 : vector<5x5xf32>
    %cst_23 = arith.constant dense<0xFF800000> : vector<5xf32>
    %256 = vector.multi_reduction <maximumf>, %255, %cst_23 [1] : vector<5x5xf32> to vector<5xf32>
    %257 = vector.shape_cast %256 : vector<5xf32> to vector<5x1xf32>
    %258 = vector.broadcast %257 : vector<5x1xf32> to vector<5x5xf32>
    %259 = arith.subf %255, %258 : vector<5x5xf32>
    %260 = math.exp %259 : vector<5x5xf32>
    %cst_24 = arith.constant dense<0.000000e+00> : vector<5xf32>
    %261 = vector.multi_reduction <add>, %260, %cst_24 [1] : vector<5x5xf32> to vector<5xf32>
    %262 = vector.shape_cast %261 : vector<5xf32> to vector<5x1xf32>
    %263 = vector.broadcast %262 : vector<5x1xf32> to vector<5x5xf32>
    %264 = arith.divf %260, %263 : vector<5x5xf32>
    %c0_25 = arith.constant 0 : index
    %c0_26 = arith.constant 0 : index
    %c0_27 = arith.constant 0 : index
    %265 = vector.load %arg2[%c0_25, %c0_26, %c0_27] : memref<2x16x5xf32, #tpu.memory_space<vmem>>, vector<1x16x5xf32>
    %266 = vector.shape_cast %265 : vector<1x16x5xf32> to vector<16x5xf32>
    %267 = vector.extract_strided_slice %266 {offsets = [0, 0], sizes = [16, 1], strides = [1, 1]} : vector<16x5xf32> to vector<16x1xf32>
    %268 = vector.extract_strided_slice %264 {offsets = [0, 0], sizes = [1, 5], strides = [1, 1]} : vector<5x5xf32> to vector<1x5xf32>
    %269 = vector.broadcast %267 : vector<16x1xf32> to vector<16x5xf32>
    %270 = vector.broadcast %268 : vector<1x5xf32> to vector<16x5xf32>
    %271 = arith.mulf %269, %270 : vector<16x5xf32>
    %272 = vector.extract_strided_slice %266 {offsets = [0, 1], sizes = [16, 1], strides = [1, 1]} : vector<16x5xf32> to vector<16x1xf32>
    %273 = vector.extract_strided_slice %264 {offsets = [1, 0], sizes = [1, 5], strides = [1, 1]} : vector<5x5xf32> to vector<1x5xf32>
    %274 = vector.broadcast %272 : vector<16x1xf32> to vector<16x5xf32>
    %275 = vector.broadcast %273 : vector<1x5xf32> to vector<16x5xf32>
    %276 = arith.mulf %274, %275 : vector<16x5xf32>
    %277 = arith.addf %271, %276 : vector<16x5xf32>
    %278 = vector.extract_strided_slice %266 {offsets = [0, 2], sizes = [16, 1], strides = [1, 1]} : vector<16x5xf32> to vector<16x1xf32>
    %279 = vector.extract_strided_slice %264 {offsets = [2, 0], sizes = [1, 5], strides = [1, 1]} : vector<5x5xf32> to vector<1x5xf32>
    %280 = vector.broadcast %278 : vector<16x1xf32> to vector<16x5xf32>
    %281 = vector.broadcast %279 : vector<1x5xf32> to vector<16x5xf32>
    %282 = arith.mulf %280, %281 : vector<16x5xf32>
    %283 = arith.addf %277, %282 : vector<16x5xf32>
    %284 = vector.extract_strided_slice %266 {offsets = [0, 3], sizes = [16, 1], strides = [1, 1]} : vector<16x5xf32> to vector<16x1xf32>
    %285 = vector.extract_strided_slice %264 {offsets = [3, 0], sizes = [1, 5], strides = [1, 1]} : vector<5x5xf32> to vector<1x5xf32>
    %286 = vector.broadcast %284 : vector<16x1xf32> to vector<16x5xf32>
    %287 = vector.broadcast %285 : vector<1x5xf32> to vector<16x5xf32>
    %288 = arith.mulf %286, %287 : vector<16x5xf32>
    %289 = arith.addf %283, %288 : vector<16x5xf32>
    %290 = vector.extract_strided_slice %266 {offsets = [0, 4], sizes = [16, 1], strides = [1, 1]} : vector<16x5xf32> to vector<16x1xf32>
    %291 = vector.extract_strided_slice %264 {offsets = [4, 0], sizes = [1, 5], strides = [1, 1]} : vector<5x5xf32> to vector<1x5xf32>
    %292 = vector.broadcast %290 : vector<16x1xf32> to vector<16x5xf32>
    %293 = vector.broadcast %291 : vector<1x5xf32> to vector<16x5xf32>
    %294 = arith.mulf %292, %293 : vector<16x5xf32>
    %295 = arith.addf %289, %294 : vector<16x5xf32>
    %c0_28 = arith.constant 0 : index
    %c0_29 = arith.constant 0 : index
    %c0_30 = arith.constant 0 : index
    %296 = vector.load %arg3[%c0_28, %c0_29, %c0_30] : memref<2x16x5xf32, #tpu.memory_space<vmem>>, vector<1x16x5xf32>
    %297 = vector.shape_cast %296 : vector<1x16x5xf32> to vector<16x5xf32>
    %298 = vector.shape_cast %295 : vector<16x5xf32> to vector<1x16x5xf32>
    tpu.vector_store %arg3[%c0_28, %c0_29, %c0_30], %298 {strides = array<i32>} : memref<2x16x5xf32, #tpu.memory_space<vmem>>, vector<1x16x5xf32>,
    %299 = vector.extract_strided_slice %225 {offsets = [5, 0], sizes = [5, 5], strides = [1, 1]} : vector<10x5xf32> to vector<5x5xf32>
    %300 = vector.extract_strided_slice %209 {offsets = [0, 0], sizes = [5, 1], strides = [1, 1]} : vector<5x5xf32> to vector<5x1xf32>
    %301 = vector.extract_strided_slice %299 {offsets = [0, 0], sizes = [1, 5], strides = [1, 1]} : vector<5x5xf32> to vector<1x5xf32>
    %302 = vector.broadcast %300 : vector<5x1xf32> to vector<5x5xf32>
    %303 = vector.broadcast %301 : vector<1x5xf32> to vector<5x5xf32>
    %304 = arith.mulf %302, %303 : vector<5x5xf32>
    %305 = vector.extract_strided_slice %209 {offsets = [0, 1], sizes = [5, 1], strides = [1, 1]} : vector<5x5xf32> to vector<5x1xf32>
    %306 = vector.extract_strided_slice %299 {offsets = [1, 0], sizes = [1, 5], strides = [1, 1]} : vector<5x5xf32> to vector<1x5xf32>
    %307 = vector.broadcast %305 : vector<5x1xf32> to vector<5x5xf32>
    %308 = vector.broadcast %306 : vector<1x5xf32> to vector<5x5xf32>
    %309 = arith.mulf %307, %308 : vector<5x5xf32>
    %310 = arith.addf %304, %309 : vector<5x5xf32>
    %311 = vector.extract_strided_slice %209 {offsets = [0, 2], sizes = [5, 1], strides = [1, 1]} : vector<5x5xf32> to vector<5x1xf32>
    %312 = vector.extract_strided_slice %299 {offsets = [2, 0], sizes = [1, 5], strides = [1, 1]} : vector<5x5xf32> to vector<1x5xf32>
    %313 = vector.broadcast %311 : vector<5x1xf32> to vector<5x5xf32>
    %314 = vector.broadcast %312 : vector<1x5xf32> to vector<5x5xf32>
    %315 = arith.mulf %313, %314 : vector<5x5xf32>
    %316 = arith.addf %310, %315 : vector<5x5xf32>
    %317 = vector.extract_strided_slice %209 {offsets = [0, 3], sizes = [5, 1], strides = [1, 1]} : vector<5x5xf32> to vector<5x1xf32>
    %318 = vector.extract_strided_slice %299 {offsets = [3, 0], sizes = [1, 5], strides = [1, 1]} : vector<5x5xf32> to vector<1x5xf32>
    %319 = vector.broadcast %317 : vector<5x1xf32> to vector<5x5xf32>
    %320 = vector.broadcast %318 : vector<1x5xf32> to vector<5x5xf32>
    %321 = arith.mulf %319, %320 : vector<5x5xf32>
    %322 = arith.addf %316, %321 : vector<5x5xf32>
    %323 = vector.extract_strided_slice %209 {offsets = [0, 4], sizes = [5, 1], strides = [1, 1]} : vector<5x5xf32> to vector<5x1xf32>
    %324 = vector.extract_strided_slice %299 {offsets = [4, 0], sizes = [1, 5], strides = [1, 1]} : vector<5x5xf32> to vector<1x5xf32>
    %325 = vector.broadcast %323 : vector<5x1xf32> to vector<5x5xf32>
    %326 = vector.broadcast %324 : vector<1x5xf32> to vector<5x5xf32>
    %327 = arith.mulf %325, %326 : vector<5x5xf32>
    %328 = arith.addf %322, %327 : vector<5x5xf32>
    %cst_31 = arith.constant dense<0xFF800000> : vector<5xf32>
    %329 = vector.multi_reduction <maximumf>, %328, %cst_31 [1] : vector<5x5xf32> to vector<5xf32>
    %330 = vector.shape_cast %329 : vector<5xf32> to vector<5x1xf32>
    %331 = vector.broadcast %330 : vector<5x1xf32> to vector<5x5xf32>
    %332 = arith.subf %328, %331 : vector<5x5xf32>
    %333 = math.exp %332 : vector<5x5xf32>
    %cst_32 = arith.constant dense<0.000000e+00> : vector<5xf32>
    %334 = vector.multi_reduction <add>, %333, %cst_32 [1] : vector<5x5xf32> to vector<5xf32>
    %335 = vector.shape_cast %334 : vector<5xf32> to vector<5x1xf32>
    %336 = vector.broadcast %335 : vector<5x1xf32> to vector<5x5xf32>
    %337 = arith.divf %333, %336 : vector<5x5xf32>
    %c1 = arith.constant 1 : index
    %c0_33 = arith.constant 0 : index
    %c0_34 = arith.constant 0 : index
    %338 = vector.load %arg2[%c1, %c0_33, %c0_34] : memref<2x16x5xf32, #tpu.memory_space<vmem>>, vector<1x16x5xf32>
    %339 = vector.shape_cast %338 : vector<1x16x5xf32> to vector<16x5xf32>
    %340 = vector.extract_strided_slice %339 {offsets = [0, 0], sizes = [16, 1], strides = [1, 1]} : vector<16x5xf32> to vector<16x1xf32>
    %341 = vector.extract_strided_slice %337 {offsets = [0, 0], sizes = [1, 5], strides = [1, 1]} : vector<5x5xf32> to vector<1x5xf32>
    %342 = vector.broadcast %340 : vector<16x1xf32> to vector<16x5xf32>
    %343 = vector.broadcast %341 : vector<1x5xf32> to vector<16x5xf32>
    %344 = arith.mulf %342, %343 : vector<16x5xf32>
    %345 = vector.extract_strided_slice %339 {offsets = [0, 1], sizes = [16, 1], strides = [1, 1]} : vector<16x5xf32> to vector<16x1xf32>
    %346 = vector.extract_strided_slice %337 {offsets = [1, 0], sizes = [1, 5], strides = [1, 1]} : vector<5x5xf32> to vector<1x5xf32>
    %347 = vector.broadcast %345 : vector<16x1xf32> to vector<16x5xf32>
    %348 = vector.broadcast %346 : vector<1x5xf32> to vector<16x5xf32>
    %349 = arith.mulf %347, %348 : vector<16x5xf32>
    %350 = arith.addf %344, %349 : vector<16x5xf32>
    %351 = vector.extract_strided_slice %339 {offsets = [0, 2], sizes = [16, 1], strides = [1, 1]} : vector<16x5xf32> to vector<16x1xf32>
    %352 = vector.extract_strided_slice %337 {offsets = [2, 0], sizes = [1, 5], strides = [1, 1]} : vector<5x5xf32> to vector<1x5xf32>
    %353 = vector.broadcast %351 : vector<16x1xf32> to vector<16x5xf32>
    %354 = vector.broadcast %352 : vector<1x5xf32> to vector<16x5xf32>
    %355 = arith.mulf %353, %354 : vector<16x5xf32>
    %356 = arith.addf %350, %355 : vector<16x5xf32>
    %357 = vector.extract_strided_slice %339 {offsets = [0, 3], sizes = [16, 1], strides = [1, 1]} : vector<16x5xf32> to vector<16x1xf32>
    %358 = vector.extract_strided_slice %337 {offsets = [3, 0], sizes = [1, 5], strides = [1, 1]} : vector<5x5xf32> to vector<1x5xf32>
    %359 = vector.broadcast %357 : vector<16x1xf32> to vector<16x5xf32>
    %360 = vector.broadcast %358 : vector<1x5xf32> to vector<16x5xf32>
    %361 = arith.mulf %359, %360 : vector<16x5xf32>
    %362 = arith.addf %356, %361 : vector<16x5xf32>
    %363 = vector.extract_strided_slice %339 {offsets = [0, 4], sizes = [16, 1], strides = [1, 1]} : vector<16x5xf32> to vector<16x1xf32>
    %364 = vector.extract_strided_slice %337 {offsets = [4, 0], sizes = [1, 5], strides = [1, 1]} : vector<5x5xf32> to vector<1x5xf32>
    %365 = vector.broadcast %363 : vector<16x1xf32> to vector<16x5xf32>
    %366 = vector.broadcast %364 : vector<1x5xf32> to vector<16x5xf32>
    %367 = arith.mulf %365, %366 : vector<16x5xf32>
    %368 = arith.addf %362, %367 : vector<16x5xf32>
    %c1_35 = arith.constant 1 : index
    %c0_36 = arith.constant 0 : index
    %c0_37 = arith.constant 0 : index
    %369 = vector.load %arg3[%c1_35, %c0_36, %c0_37] : memref<2x16x5xf32, #tpu.memory_space<vmem>>, vector<1x16x5xf32>
    %370 = vector.shape_cast %369 : vector<1x16x5xf32> to vector<16x5xf32>
    %371 = vector.shape_cast %368 : vector<16x5xf32> to vector<1x16x5xf32>
    tpu.vector_store %arg3[%c1_35, %c0_36, %c0_37], %371 {strides = array<i32>} : memref<2x16x5xf32, #tpu.memory_space<vmem>>, vector<1x16x5xf32>,
    return
  }
}

</mosaic_0001>

<bundles_post_ra>
// kernel: forward.1
= control target key start
LH: loop header
LB: loop body
LE: loop exit
PB: predicated region body
PF: predicated region fallthrough
CT: control target
= control target key end

     0   :  { %v757_v0 = vmov 0   ;;  %v758_v3 = vmov 1   ;;  %v759_v4 = vmov 4   ;;  %v760_v5 = vmov 2   ;;  %s993_s0 = inlined_call_operand.vmem [shape: f32[55,16], index: 0, kind: input, shape index: {}]   ;;  %s994_s1 = inlined_call_operand.vmem [shape: f32[10,16], index: 1, kind: input, shape index: {}]   ;;  %s995_s2 = inlined_call_operand.vmem [shape: f32[2,16,5], index: 2, kind: input, shape index: {}]   ;;  %s996_s3 = inlined_call_operand.vmem [shape: f32[2,16,5], index: 3, kind: output, shape index: {}]  }
   0x1   :  { %696 = vset.pattern.permute.xlu1 %v757_v0  ;;  %695 = vset.pattern.permute.xlu0 %v757_v0  ;;  %v15_v1 = vld [vmem:[%s993_s0 + $0x5] sm:$0x1f]  ;;  %v14_v2 = vld [vmem:[%s993_s0] sm:$0x1f]  ;;  %v761_v7 = vmov 3   ;;  %vm370_vm0 = vcmask 130048   ;;  %v31_v17 = vlaneseq }
   0x2   :  { %85 = vperm.xlu1 %696, %v15_v1   ;;  %28 = vperm.xlu0 %695, %v14_v2   ;;  %v20_v6 = vld [vmem:[%s993_s0 + $0x1e] sm:$0x1f]  ;;  %v21_v8 = vld [vmem:[%s993_s0 + $0x23] sm:$0x1f]  ;;  %v24_v9 = vld [vmem:[%s993_s0 + $0x2a] sm:$0x1f] }
   0x3   :  { %v25_v10 = vld [vmem:[%s993_s0 + $0x2f] sm:$0x1f]  ;;  %v683_v11 = vld [vmem:[%s993_s0 + $0x34] ss:$0 sm:$0xff]  ;;  %v363_v12 = vld [vmem:[%s994_s1 + $0x8] sm:$0x3] }
   0x4   :  { %v823_v13 = vmul.f32 %v683_v11, %v363_v12  ;;  %v362_v14 = vld [vmem:[%s994_s1] sm:$0xff]  ;;  %v829_v18 = vshrl.u32 %v31_v17, 7  ;;  %v18_v22 = vld [vmem:[%s993_s0 + $0x14] sm:$0x1f]  ;;  %v19_v34 = vld [vmem:[%s993_s0 + $0x19] sm:$0x1f] }
   0x5   :  { %v368_v15 = vmul.f32 %v683_v11, %v362_v14  ;;  %v681_v53 = vld [vmem:[%s993_s0 + $0x28] ss:$0 sm:$0xff]  ;;  %v868_v63 = vld [vmem:[%s993_s0 + $0xa] sm:$0x1f]  ;;  %vm374_vm1 = vcmask 123904   ;;  %vm454_vm2 = vcmask 36864  }
   0x6   :  { %697 = vset.pattern.permute.xlu1 %v758_v3  ;;  %700 = vset.pattern.permute.xlu0 %v759_v4  ;;  %v832_v21 = vsub.s32 0, %v829_v18  ;;  %v838_v23 = vsub.s32 1, %v829_v18  ;;  %v841_v26 = vsub.s32 2, %v829_v18  ;;  %v846_v29 = vsub.s32 3, %v829_v18 }
   0x7   :  { %94 = vperm.xlu1 %697, %v15_v1   ;;  %67 = vperm.xlu0 %700, %v14_v2   ;;  %v371_v16 = vsel %vm370_vm0, %v368_v15, 0.0  ;;  %v850_v31 = vsub.s32 4, %v829_v18  ;;  %vm548_vm3 = vcmask 39936  }
   0x8   :  { %v34_v27 = vrot.slane %v18_v22, %v832_v21  ;;  %v43_v28 = vrot.slane %v18_v22, %v838_v23  ;;  %v53_v30 = vrot.slane %v18_v22, %v841_v26  ;;  %v100_v37 = vrot.slane %v19_v34, %v838_v23 }
   0x9   :  { %v63_v38 = vrot.slane %v18_v22, %v846_v29  ;;  %v91_v41 = vrot.slane %v19_v34, %v832_v21  ;;  %v73_v42 = vrot.slane %v18_v22, %v850_v31  ;;  %v110_v48 = vrot.slane %v19_v34, %v841_v26 }
   0xa   :  { %v120_v52 = vrot.slane %v19_v34, %v846_v29  ;;  %v130_v59 = vrot.slane %v19_v34, %v850_v31  ;;  %v148_v11 = vrot.slane %v868_v63, %v832_v21 }
   0xb   :  { %698 = vset.pattern.permute.xlu1 %v760_v5  ;;  %701 = vset.pattern.permute.xlu0 %v758_v3 }
   0xc   :  { %47 = vperm.xlu1 %698, %v14_v2   ;;  %37 = vperm.xlu0 %701, %v14_v2  }
  0x10   :  { %699 = vset.pattern.permute.xlu1 %v761_v7  ;;  %151 = vperm.xlu0 %701, %v20_v6  }
  0x11   :  { %57 = vperm.xlu1 %699, %v14_v2  }
  0x14   :  { %704 = vset.pattern.permute.xlu0 %v760_v5 }
  0x15   :  { %114 = vperm.xlu1 %699, %v15_v1   ;;  %104 = vperm.xlu0 %704, %v15_v1  }
  0x19   :  { %702 = vset.pattern.permute.xlu1 %v759_v4  ;;  %161 = vperm.xlu0 %704, %v20_v6  }
  0x1a   :  { %124 = vperm.xlu1 %702, %v15_v1  }
  0x1d   :  { %708 = vset.pattern.permute.xlu0 %v761_v7 }
  0x1e   :  { %703 = vset.pattern.permute.xlu1 %v757_v0  ;;  %229 = vperm.xlu0 %708, %v21_v8  }
  0x1f   :  { %142 = vperm.xlu1 %703, %v20_v6  }
  0x22   :  { %710 = vset.pattern.permute.xlu0 %v757_v0 }
  0x23   :  { %200 = vperm.xlu1 %703, %v21_v8   ;;  %192 = vperm.xlu0 %710, %v24_v9   ;;  %v157_v9 = vrot.slane %v868_v63, %v838_v23 }
  0x27   :  { %705 = vset.pattern.permute.xlu1 %v758_v3 }
  0x28   :  { %209 = vperm.xlu1 %705, %v21_v8  }
  0x2c   :  { %706 = vset.pattern.permute.xlu1 %v760_v5 }
  0x2d   :  { %219 = vperm.xlu1 %706, %v21_v8  }
  0x31   :  { %707 = vset.pattern.permute.xlu1 %v761_v7 }
  0x32   :  { %171 = vperm.xlu1 %707, %v20_v6  }
  0x36   :  { %709 = vset.pattern.permute.xlu1 %v759_v4 }
  0x37   :  { %181 = vperm.xlu1 %709, %v20_v6  }
  0x3b   :  { %239 = vperm.xlu1 %709, %v21_v8  }
  0x3f   :  { %711 = vset.pattern.permute.xlu1 %v757_v0 }
  0x40   :  { %250 = vperm.xlu1 %711, %v25_v10   ;;  %v682_v10 = vld [vmem:[%s993_s0 + $0x29] ss:$0 sm:$0xff] }
  0x44   :  { %716 = vset.pattern.permute.xlu1 %v760_v5 }
  0x64   :  { %372 = vadd.xlane.f32.xlu1 %v371_v16 }
  0x81   :  { %v86_v19 = vpop.permute.xlu1 %85  ;;  %v29_v20 = vpop.permute.xlu0 %28 }
  0x82   :  { %v35_v35 = vmul.f32 %v34_v27, %v29_v20  ;;  %v92_v49 = vmul.f32 %v91_v41, %v86_v19  ;;  %v880_v19 = vld [vmem:[%s993_s0 + $0xf] sm:$0x1f]  ;;  %v177_v41 = vrot.slane %v868_v63, %v846_v29 }
  0x83   :  { %v215_v27 = vrot.slane %v880_v19, %v838_v23  ;;  %v225_v34 = vrot.slane %v880_v19, %v841_v26 }
  0x86   :  { %v95_v24 = vpop.permute.xlu1 %94  ;;  %v68_v25 = vpop.permute.xlu0 %67 }
  0x87   :  { %v101_v46 = vmul.f32 %v100_v37, %v95_v24  ;;  %v74_v50 = vmul.f32 %v73_v42, %v68_v25  ;;  %v206_v24 = vrot.slane %v880_v19, %v832_v21  ;;  %v167_v37 = vrot.slane %v868_v63, %v841_v26 }
  0x89   :  { %v102_v56 = vadd.f32 %v101_v46, %v92_v49 }
  0x8b   :  { %v48_v32 = vpop.permute.xlu1 %47  ;;  %v38_v33 = vpop.permute.xlu0 %37 }
  0x8c   :  { %v44_v36 = vmul.f32 %v43_v28, %v38_v33  ;;  %v54_v39 = vmul.f32 %v53_v30, %v48_v32 }
  0x8e   :  { %v45_v40 = vadd.f32 %v44_v36, %v35_v35 }
  0x8f   :  { %v152_v43 = vpop.permute.xlu0 %151 }
  0x90   :  { %v58_v44 = vpop.permute.xlu1 %57  ;;  %v55_v45 = vadd.f32 %v54_v39, %v45_v40  ;;  %v158_v16 = vmul.f32 %v157_v9, %v152_v43 }
  0x91   :  { %v64_v47 = vmul.f32 %v63_v38, %v58_v44 }
  0x93   :  { %v65_v51 = vadd.f32 %v64_v47, %v55_v45 }
  0x94   :  { %v115_v54 = vpop.permute.xlu1 %114  ;;  %v105_v55 = vpop.permute.xlu0 %104 }
  0x95   :  { %v75_v57 = vadd.f32 %v74_v50, %v65_v51  ;;  %v111_v58 = vmul.f32 %v110_v48, %v105_v55  ;;  %v121_v61 = vmul.f32 %v120_v52, %v115_v54  ;;  %v375_v48 = vsel %vm374_vm1, %v823_v13, 0.0  ;;  %v904_v52 = vld [vmem:[%s993_s0 + $0x35] ss:$0 sm:$0xff] }
  0x96   :  { %v187_v13 = vrot.slane %v868_v63, %v850_v31 }
  0x97   :  { %v80_v60 = vadd.f32 %v681_v53, %v75_v57  ;;  %v112_v62 = vadd.f32 %v111_v58, %v102_v56  ;;  %v235_v56 = vrot.slane %v880_v19, %v846_v29 }
  0x98   :  { %v162_v39 = vpop.permute.xlu0 %161 }
  0x99   :  { %v81_v1 = vmul.f32 3.0, %v80_v60  ;;  %v125_v2 = vpop.permute.xlu1 %124  ;;  %v122_v6 = vadd.f32 %v121_v61, %v112_v62  ;;  %v168_v43 = vmul.f32 %v167_v37, %v162_v39 }
  0x9a   :  { %v131_v8 = vmul.f32 %v130_v59, %v125_v2  ;;  %v245_v59 = vrot.slane %v880_v19, %v850_v31 }
  0x9b   :  { %735 = vtanh.f32 %v81_v1 }
  0x9c   :  { %v132_v12 = vadd.f32 %v131_v8, %v122_v6 }
  0x9d   :  { %v230_v57 = vpop.permute.xlu0 %229 }
  0x9e   :  { %v137_v14 = vadd.f32 %v682_v10, %v132_v12  ;;  %v143_v15 = vpop.permute.xlu1 %142  ;;  %v236_v58 = vmul.f32 %v235_v56, %v230_v57 }
  0x9f   :  { %v149_v17 = vmul.f32 %v148_v11, %v143_v15 }
  0xa0   :  { %v138_v20 = vmul.f32 3.0, %v137_v14 }
  0xa1   :  { %v159_v22 = vadd.f32 %v158_v16, %v149_v17 }
  0xa2   :  { %737 = vtanh.f32 %v138_v20  ;;  %v201_v25 = vpop.permute.xlu1 %200  ;;  %v193_v2 = vpop.permute.xlu0 %192 }
  0xa3   :  { %v207_v30 = vmul.f32 %v206_v24, %v201_v25  ;;  %v169_v45 = vadd.f32 %v168_v43, %v159_v22 }
  0xa5   :  { %v736_v28 = vpop.eup %735 }
  0xa6   :  { %258 = vperm.xlu0 %710, %v736_v28  }
  0xa7   :  { %v210_v32 = vpop.permute.xlu1 %209 }
  0xa8   :  { %v216_v33 = vmul.f32 %v215_v27, %v210_v32 }
  0xaa   :  { %v217_v35 = vadd.f32 %v216_v33, %v207_v30  ;;  %712 = vset.pattern.permute.xlu0 %v758_v3 }
  0xab   :  { %267 = vperm.xlu0 %712, %v736_v28  }
  0xac   :  { %v738_v36 = vpop.eup %737  ;;  %v220_v38 = vpop.permute.xlu1 %219 }
  0xad   :  { %v226_v40 = vmul.f32 %v225_v34, %v220_v38  ;;  %327 = vperm.xlu1 %716, %v738_v36  }
  0xaf   :  { %v227_v42 = vadd.f32 %v226_v40, %v217_v35  ;;  %713 = vset.pattern.permute.xlu0 %v757_v0 }
  0xb0   :  { %308 = vperm.xlu0 %713, %v738_v36  }
  0xb1   :  { %v172_v44 = vpop.permute.xlu1 %171  ;;  %717 = vset.pattern.permute.xlu1 %v761_v7  ;;  %v237_v61 = vadd.f32 %v236_v58, %v227_v42 }
  0xb2   :  { %v178_v46 = vmul.f32 %v177_v41, %v172_v44  ;;  %287 = vperm.xlu1 %717, %v736_v28  }
  0xb4   :  { %v179_v47 = vadd.f32 %v178_v46, %v169_v45  ;;  %714 = vset.pattern.permute.xlu0 %v758_v3 }
  0xb5   :  { %317 = vperm.xlu0 %714, %v738_v36  }
  0xb6   :  { %337 = vperm.xlu1 %717, %v738_v36   ;;  %v182_v49 = vpop.permute.xlu1 %181 }
  0xb7   :  { %v188_v60 = vmul.f32 %v187_v13, %v182_v49 }
  0xb9   :  { %715 = vset.pattern.permute.xlu0 %v760_v5  ;;  %v189_v1 = vadd.f32 %v188_v60, %v179_v47 }
  0xba   :  { %718 = vset.pattern.permute.xlu1 %v759_v4  ;;  %277 = vperm.xlu0 %715, %v736_v28   ;;  %v240_v50 = vpop.permute.xlu1 %239 }
  0xbb   :  { %297 = vperm.xlu1 %718, %v736_v28   ;;  %v246_v62 = vmul.f32 %v245_v59, %v240_v50  ;;  %v195_v8 = vadd.f32 %v193_v2, %v189_v1 }
  0xbd   :  { %v247_v6 = vadd.f32 %v246_v62, %v237_v61  ;;  %v196_v10 = vmul.f32 3.0, %v195_v8 }
  0xbe   :  { %720 = vset.pattern.permute.xlu0 %v757_v0 }
  0xbf   :  { %347 = vperm.xlu1 %718, %v738_v36   ;;  %v251_v51 = vpop.permute.xlu1 %250 }
  0xc0   :  { %v253_v9 = vadd.f32 %v251_v51, %v247_v6  ;;  %v685_v6 = vld [vmem:[%s993_s0 + $0x36] ss:$0 sm:$0xff] }
  0xc2   :  { %v254_v11 = vmul.f32 3.0, %v253_v9 }
  0xc3   :  { %719 = vset.pattern.permute.xlu1 %v757_v0 }
  0xd9   :  { %376 = vadd.xlane.f32.xlu0 %v375_v48 }
  0xf1   :  { %v373_v53 = vpop.xlane.xlu1 %372 }
  0xf2   :  { %v382_v54 = vadd.f32 %v904_v52, %v373_v53 }
  0xf4   :  { %739 = vtanh.f32 %v382_v54 }
  0xf5   :  { %741 = vtanh.f32 %v196_v10 }
  0xf6   :  { %743 = vtanh.f32 %v254_v11 }
  0xfe   :  { %v740_v55 = vpop.eup %739 }
  0xff   :  { %388 = vperm.xlu1 %719, %v740_v55   ;;  %v742_v16 = vpop.eup %741 }
 0x100   :  { %v744_v17 = vpop.eup %743  ;;  %v314_v19 = vrot.slane %v742_v16, %v832_v21  ;;  %v323_v22 = vrot.slane %v742_v16, %v838_v23  ;;  %v333_v34 = vrot.slane %v742_v16, %v841_v26  ;;  %v343_v45 = vrot.slane %v742_v16, %v846_v29 }
 0x101   :  { %v273_v24 = vrot.slane %v744_v17, %v838_v23  ;;  %v264_v32 = vrot.slane %v744_v17, %v832_v21  ;;  %v283_v37 = vrot.slane %v744_v17, %v841_v26  ;;  %v293_v41 = vrot.slane %v744_v17, %v846_v29 }
 0x102   :  { %v303_v48 = vrot.slane %v744_v17, %v850_v31  ;;  %v353_v50 = vrot.slane %v742_v16, %v850_v31 }
 0x125   :  { %v259_v12 = vpop.permute.xlu0 %258 }
 0x126   :  { %v265_v36 = vmul.f32 %v264_v32, %v259_v12 }
 0x12a   :  { %v268_v14 = vpop.permute.xlu0 %267 }
 0x12b   :  { %v274_v33 = vmul.f32 %v273_v24, %v268_v14 }
 0x12c   :  { %v328_v63 = vpop.permute.xlu1 %327 }
 0x12d   :  { %v334_v38 = vmul.f32 %v333_v34, %v328_v63  ;;  %v275_v40 = vadd.f32 %v274_v33, %v265_v36  ;;  %v558_v36 = vsub.s32 6, %v829_v18 }
 0x12f   :  { %v309_v15 = vpop.permute.xlu0 %308 }
 0x130   :  { %v315_v27 = vmul.f32 %v314_v19, %v309_v15 }
 0x131   :  { %v288_v20 = vpop.permute.xlu1 %287 }
 0x132   :  { %v294_v46 = vmul.f32 %v293_v41, %v288_v20 }
 0x134   :  { %v318_v25 = vpop.permute.xlu0 %317 }
 0x135   :  { %v324_v28 = vmul.f32 %v323_v22, %v318_v25  ;;  %v338_v30 = vpop.permute.xlu1 %337 }
 0x136   :  { %v344_v49 = vmul.f32 %v343_v45, %v338_v30 }
 0x137   :  { %v325_v35 = vadd.f32 %v324_v28, %v315_v27 }
 0x139   :  { %v278_v39 = vpop.permute.xlu0 %277  ;;  %v335_v44 = vadd.f32 %v334_v38, %v325_v35  ;;  %v553_v35 = vsub.s32 5, %v829_v18 }
 0x13a   :  { %v284_v42 = vmul.f32 %v283_v37, %v278_v39  ;;  %v298_v43 = vpop.permute.xlu1 %297  ;;  %v564_v37 = vsub.s32 7, %v829_v18 }
 0x13b   :  { %v304_v53 = vmul.f32 %v303_v48, %v298_v43  ;;  %v345_v55 = vadd.f32 %v344_v49, %v335_v44 }
 0x13c   :  { %v285_v47 = vadd.f32 %v284_v42, %v275_v40 }
 0x13e   :  { %v295_v51 = vadd.f32 %v294_v46, %v285_v47  ;;  %v348_v54 = vpop.permute.xlu1 %347 }
 0x13f   :  { %v354_v56 = vmul.f32 %v353_v50, %v348_v54  ;;  %v466_v50 = vld [vmem:[%s995_s2] sm:$0xff] }
 0x140   :  { %v305_v13 = vadd.f32 %v304_v53, %v295_v51 }
 0x141   :  { %v355_v57 = vadd.f32 %v354_v56, %v345_v55 }
 0x143   :  { %v356_v58 = vsub.f32 %v355_v57, %v305_v13  ;;  %v467_v13 = vld [vmem:[%s995_s2 + $0x8] sm:$0xff]  ;;  %v686_v57 = vld [vmem:[%s995_s2 + $0x10] sm:$0xff] }
 0x145   :  { %v357_v59 = vmul.f32 3.0, %v356_v58  ;;  %v687_v58 = vld [vmem:[%s995_s2 + $0x18] sm:$0xff] }
 0x147   :  { %745 = vtanh.f32 %v357_v59 }
 0x151   :  { %v746_v60 = vpop.eup %745 }
 0x152   :  { %406 = vperm.xlu1 %719, %v746_v60  }
 0x156   :  { %721 = vset.pattern.permute.xlu1 %v758_v3 }
 0x157   :  { %415 = vperm.xlu1 %721, %v746_v60  }
 0x15b   :  { %722 = vset.pattern.permute.xlu1 %v760_v5 }
 0x15c   :  { %425 = vperm.xlu1 %722, %v746_v60  }
 0x160   :  { %723 = vset.pattern.permute.xlu1 %v761_v7 }
 0x161   :  { %435 = vperm.xlu1 %723, %v746_v60  }
 0x165   :  { %724 = vset.pattern.permute.xlu1 %v759_v4 }
 0x166   :  { %445 = vperm.xlu1 %724, %v746_v60   ;;  %v377_v61 = vpop.xlane.xlu0 %376 }
 0x167   :  { %v383_v62 = vadd.f32 %v904_v52, %v377_v61 }
 0x169   :  { %747 = vtanh.f32 %v383_v62 }
 0x16a   :  { %725 = vset.pattern.permute.xlu1 %v757_v0 }
 0x173   :  { %v748_v1 = vpop.eup %747 }
 0x174   :  { %393 = vperm.xlu0 %720, %v748_v1  }
 0x17e   :  { %v389_v2 = vpop.permute.xlu1 %388 }
 0x17f   :  { %v400_v9 = vmul.f32 %v685_v6, %v389_v2 }
 0x181   :  { %v402_v11 = vmax.f32 %v400_v9, 0.0 }
 0x183   :  { %v412_v14 = vrot.slane %v402_v11, %v832_v21  ;;  %v421_v63 = vrot.slane %v402_v11, %v838_v23  ;;  %v431_v15 = vrot.slane %v402_v11, %v841_v26  ;;  %v441_v20 = vrot.slane %v402_v11, %v846_v29 }
 0x184   :  { %v451_v27 = vrot.slane %v402_v11, %v850_v31  ;;  %v554_v38 = vrot.slane %v402_v11, %v553_v35  ;;  %v559_v39 = vrot.slane %v402_v11, %v558_v36  ;;  %v565_v42 = vrot.slane %v402_v11, %v564_v37 }
 0x1d1   :  { %v407_v8 = vpop.permute.xlu1 %406 }
 0x1d2   :  { %v413_v16 = vmul.f32 %v412_v14, %v407_v8  ;;  %v555_v44 = vmul.f32 %v554_v38, %v407_v8 }
 0x1d6   :  { %v416_v10 = vpop.permute.xlu1 %415 }
 0x1d7   :  { %v422_v52 = vmul.f32 %v421_v63, %v416_v10  ;;  %v560_v41 = vmul.f32 %v559_v39, %v416_v10 }
 0x1d9   :  { %v423_v22 = vadd.f32 %v422_v52, %v413_v16  ;;  %v561_v47 = vadd.f32 %v560_v41, %v555_v44 }
 0x1db   :  { %v426_v12 = vpop.permute.xlu1 %425 }
 0x1dc   :  { %v432_v17 = vmul.f32 %v431_v15, %v426_v12  ;;  %v566_v45 = vmul.f32 %v565_v42, %v426_v12 }
 0x1de   :  { %v433_v25 = vadd.f32 %v432_v17, %v423_v22  ;;  %v567_v51 = vadd.f32 %v566_v45, %v561_v47 }
 0x1e0   :  { %v436_v19 = vpop.permute.xlu1 %435 }
 0x1e1   :  { %v442_v24 = vmul.f32 %v441_v20, %v436_v19 }
 0x1e3   :  { %v443_v30 = vadd.f32 %v442_v24, %v433_v25 }
 0x1e5   :  { %v446_v28 = vpop.permute.xlu1 %445 }
 0x1e6   :  { %v452_v32 = vmul.f32 %v451_v27, %v446_v28 }
 0x1e8   :  { %v453_v33 = vadd.f32 %v452_v32, %v443_v30 }
 0x1ea   :  { %v455_v34 = vsel %vm454_vm2, %v453_v33, -inf }
 0x1eb   :  { %456 = vmax.xlane.f32.xlu1 %v455_v34 }
 0x1f3   :  { %v394_v40 = vpop.permute.xlu0 %393 }
 0x1f4   :  { %v401_v43 = vmul.f32 %v685_v6, %v394_v40 }
 0x1f6   :  { %v403_v46 = vmax.f32 %v401_v43, 0.0 }
 0x1f8   :  { %v571_v48 = vrot.slane %v403_v46, %v832_v21  ;;  %v577_v49 = vrot.slane %v403_v46, %v838_v23 }
 0x1fa   :  { %v572_v18 = vmul.f32 %v571_v48, %v436_v19  ;;  %v578_v54 = vmul.f32 %v577_v49, %v446_v28 }
 0x1fc   :  { %v573_v53 = vadd.f32 %v572_v18, %v567_v51  ;;  %470 = vperm.xlu1 %725, %v466_v50  }
 0x1fe   :  { %v579_v55 = vadd.f32 %v578_v54, %v573_v53 }
 0x200   :  { %v580_v56 = vsel %vm454_vm2, %v579_v55, -inf  ;;  %726 = vset.pattern.permute.xlu1 %v758_v3 }
 0x201   :  { %581 = vmax.xlane.f32.xlu0 %v580_v56  ;;  %485 = vperm.xlu1 %726, %v466_v50  }
 0x205   :  { %489 = vperm.xlu1 %726, %v467_v13  }
 0x209   :  { %727 = vset.pattern.permute.xlu1 %v757_v0 }
 0x20a   :  { %596 = vperm.xlu1 %727, %v686_v57  }
 0x20e   :  { %601 = vperm.xlu1 %727, %v687_v58  }
 0x212   :  { %728 = vset.pattern.permute.xlu1 %v758_v3 }
 0x213   :  { %611 = vperm.xlu1 %728, %v686_v57  }
 0x217   :  { %475 = vperm.xlu0 %720, %v467_v13   ;;  %615 = vperm.xlu1 %728, %v687_v58  }
 0x21b   :  { %730 = vset.pattern.permute.xlu1 %v760_v5  ;;  %729 = vset.pattern.permute.xlu0 %v760_v5 }
 0x21c   :  { %505 = vperm.xlu1 %730, %v467_v13   ;;  %501 = vperm.xlu0 %729, %v466_v50  }
 0x220   :  { %627 = vperm.xlu1 %730, %v686_v57   ;;  %631 = vperm.xlu0 %729, %v687_v58  }
 0x224   :  { %731 = vset.pattern.permute.xlu1 %v761_v7  ;;  %732 = vset.pattern.permute.xlu0 %v761_v7 }
 0x225   :  { %517 = vperm.xlu1 %731, %v466_v50   ;;  %521 = vperm.xlu0 %732, %v467_v13  }
 0x229   :  { %643 = vperm.xlu1 %731, %v686_v57   ;;  %733 = vset.pattern.permute.xlu0 %v759_v4 }
 0x22a   :  { %533 = vperm.xlu0 %733, %v466_v50  }
 0x22d   :  { %647 = vperm.xlu1 %731, %v687_v58  }
 0x231   :  { %734 = vset.pattern.permute.xlu1 %v759_v4 }
 0x232   :  { %537 = vperm.xlu1 %734, %v467_v13  }
 0x278   :  { %v457_v0 = vpop.xlane.xlu1 %456 }
 0x279   :  { %v458_v3 = vsub.f32 %v453_v33, %v457_v0 }
 0x27b   :  { %v459_v5 = vmul.f32 1.442695, %v458_v3 }
 0x27c   :  { %v471_v4 = vpop.permute.xlu1 %470 }
 0x27d   :  { %749 = vpow2.f32 %v459_v5 }
 0x280   :  { %v486_v6 = vpop.permute.xlu1 %485 }
 0x284   :  { %v490_v8 = vpop.permute.xlu1 %489 }
 0x287   :  { %v750_v59 = vpop.eup %749 }
 0x288   :  { %v461_v60 = vsel %vm454_vm2, %v750_v59, 0.0 }
 0x289   :  { %462 = vadd.xlane.f32.xlu1 %v461_v60  ;;  %v597_v9 = vpop.permute.xlu1 %596 }
 0x28d   :  { %v602_v10 = vpop.permute.xlu1 %601 }
 0x28e   :  { %v582_v61 = vpop.xlane.xlu0 %581 }
 0x28f   :  { %v583_v7 = vsub.f32 %v579_v55, %v582_v61 }
 0x291   :  { %v584_v62 = vmul.f32 1.442695, %v583_v7 }
 0x292   :  { %v612_v11 = vpop.permute.xlu1 %611 }
 0x293   :  { %751 = vpow2.f32 %v584_v62 }
 0x296   :  { %v616_v12 = vpop.permute.xlu1 %615  ;;  %v476_v20 = vpop.permute.xlu0 %475 }
 0x29a   :  { %659 = vperm.xlu1 %734, %v686_v57  }
 0x29b   :  { %v506_v14 = vpop.permute.xlu1 %505  ;;  %v502_v22 = vpop.permute.xlu0 %501 }
 0x29d   :  { %v752_v1 = vpop.eup %751 }
 0x29e   :  { %v586_v2 = vsel %vm454_vm2, %v752_v1, 0.0 }
 0x29f   :  { %587 = vadd.xlane.f32.xlu0 %v586_v2  ;;  %v628_v63 = vpop.permute.xlu1 %627  ;;  %v632_v24 = vpop.permute.xlu0 %631 }
 0x2a4   :  { %v518_v52 = vpop.permute.xlu1 %517  ;;  %v522_v27 = vpop.permute.xlu0 %521 }
 0x2a8   :  { %v644_v15 = vpop.permute.xlu1 %643 }
 0x2a9   :  { %v534_v40 = vpop.permute.xlu0 %533 }
 0x2ac   :  { %v648_v16 = vpop.permute.xlu1 %647 }
 0x2b1   :  { %v538_v17 = vpop.permute.xlu1 %537 }
 0x2b5   :  { %663 = vperm.xlu0 %733, %v687_v58  }
 0x316   :  { %v463_v19 = vpop.xlane.xlu1 %462 }
 0x317   :  { %753 = vrcp.f32 %v463_v19 }
 0x321   :  { %v754_v25 = vpop.eup %753 }
 0x322   :  { %v465_v28 = vmul.f32 %v754_v25, %v750_v59 }
 0x324   :  { %v481_v30 = vrot.slane %v465_v28, %v832_v21  ;;  %v495_v32 = vrot.slane %v465_v28, %v838_v23  ;;  %v511_v33 = vrot.slane %v465_v28, %v841_v26  ;;  %v527_v34 = vrot.slane %v465_v28, %v846_v29 }
 0x325   :  { %v543_v39 = vrot.slane %v465_v28, %v850_v31 }
 0x326   :  { %v482_v35 = vmul.f32 %v481_v30, %v471_v4  ;;  %v483_v36 = vmul.f32 %v481_v30, %v476_v20  ;;  %v496_v37 = vmul.f32 %v495_v32, %v486_v6  ;;  %v497_v38 = vmul.f32 %v495_v32, %v490_v8 }
 0x327   :  { %v512_v43 = vmul.f32 %v511_v33, %v502_v22  ;;  %v513_v44 = vmul.f32 %v511_v33, %v506_v14  ;;  %v528_v47 = vmul.f32 %v527_v34, %v518_v52  ;;  %v529_v48 = vmul.f32 %v527_v34, %v522_v27  ;;  %v660_v52 = vpop.permute.xlu1 %659 }
 0x328   :  { %v498_v41 = vadd.f32 %v496_v37, %v482_v35  ;;  %v499_v42 = vadd.f32 %v497_v38, %v483_v36  ;;  %v544_v18 = vmul.f32 %v543_v39, %v534_v40  ;;  %v545_v53 = vmul.f32 %v543_v39, %v538_v17 }
 0x32a   :  { %v514_v45 = vadd.f32 %v512_v43, %v498_v41  ;;  %v515_v46 = vadd.f32 %v513_v44, %v499_v42 }
 0x32c   :  { %v588_v49 = vpop.xlane.xlu0 %587  ;;  %v530_v50 = vadd.f32 %v528_v47, %v514_v45  ;;  %v531_v51 = vadd.f32 %v529_v48, %v515_v46 }
 0x32d   :  { %755 = vrcp.f32 %v588_v49 }
 0x32e   :  { %v546_v54 = vadd.f32 %v544_v18, %v530_v50  ;;  %v547_v55 = vadd.f32 %v545_v53, %v531_v51 }
 0x330   :  { %549 = vst.msk [vmem:[%s996_s3] sm:$0xff] %vm548_vm3, %v546_v54  ;;  %550 = vst.msk [vmem:[%s996_s3 + $0x8] sm:$0xff] %vm548_vm3, %v547_v55 }
 0x337   :  { %v756_v56 = vpop.eup %755 }
 0x338   :  { %v590_v13 = vmul.f32 %v756_v56, %v752_v1 }
 0x33a   :  { %v607_v57 = vrot.slane %v590_v13, %v832_v21  ;;  %v621_v58 = vrot.slane %v590_v13, %v838_v23  ;;  %v637_v0 = vrot.slane %v590_v13, %v841_v26  ;;  %v653_v3 = vrot.slane %v590_v13, %v846_v29  ;;  %v664_v23 = vpop.permute.xlu0 %663 }
 0x33b   :  { %v669_v7 = vrot.slane %v590_v13, %v850_v31 }
 0x33c   :  { %v608_v5 = vmul.f32 %v607_v57, %v597_v9  ;;  %v609_v59 = vmul.f32 %v607_v57, %v602_v10  ;;  %v622_v60 = vmul.f32 %v621_v58, %v612_v11  ;;  %v623_v61 = vmul.f32 %v621_v58, %v616_v12 }
 0x33d   :  { %v638_v4 = vmul.f32 %v637_v0, %v628_v63  ;;  %v639_v6 = vmul.f32 %v637_v0, %v632_v24  ;;  %v654_v14 = vmul.f32 %v653_v3, %v644_v15  ;;  %v655_v21 = vmul.f32 %v653_v3, %v648_v16 }
 0x33e   :  { %v624_v62 = vadd.f32 %v622_v60, %v608_v5  ;;  %v625_v2 = vadd.f32 %v623_v61, %v609_v59  ;;  %v670_v20 = vmul.f32 %v669_v7, %v660_v52  ;;  %v671_v29 = vmul.f32 %v669_v7, %v664_v23 }
 0x340   :  { %v640_v8 = vadd.f32 %v638_v4, %v624_v62  ;;  %v641_v1 = vadd.f32 %v639_v6, %v625_v2 }
 0x342   :  { %v656_v17 = vadd.f32 %v654_v14, %v640_v8  ;;  %v657_v26 = vadd.f32 %v655_v21, %v641_v1 }
 0x344   :  { %v672_v9 = vadd.f32 %v670_v20, %v656_v17  ;;  %v673_v10 = vadd.f32 %v671_v29, %v657_v26 }
 0x346   :  { %688 = vst.msk [vmem:[%s996_s3 + $0x10] sm:$0xff] %vm548_vm3, %v672_v9  ;;  %689 = vst.msk [vmem:[%s996_s3 + $0x18] sm:$0xff] %vm548_vm3, %v673_v10 }

</bundles_post_ra>
